<compile_context>
chip_gen: v6e
topology: v6e:2x2x1
jax: 0.10.0
libtpu: 0.0.40
codegen_flags: <defaults>
</compile_context>

<pallas_src>
import jax
import jax.numpy as jnp
from jax.experimental import pallas as pl
from jax.experimental.pallas import tpu as pltpu


# =============================== Pallas kernels ===============================

def _backfore_kernel(x_ref, lbl_ref, fore_ref, ce_ref):
    """Softmax over 2 channels, fore-mask threshold, SegLoss CE partial sum."""
    x = x_ref[0].astype(jnp.float32)                    # (2, L) logits
    lbl = lbl_ref[0]                                    # (1, L) int32 labels
    m = jnp.max(x, axis=0, keepdims=True)
    e = jnp.exp(x - m)
    p = e * pl.reciprocal(jnp.sum(e, axis=0, keepdims=True), approx=True)
    fore_ref[0] = (p[1:2] > 0.5).astype(jnp.float32)    # (1, L) foreground mask
    # PyTorch SegLoss feeds the *softmax output* to F.cross_entropy, i.e. a
    # second log-softmax is applied to the probabilities.  Keep that semantic.
    m2 = jnp.max(p, axis=0, keepdims=True)
    lse = jnp.log(jnp.sum(jnp.exp(p - m2), axis=0, keepdims=True)) + m2
    cls = jax.lax.broadcasted_iota(jnp.int32, p.shape, 0)
    sel = jnp.sum(jnp.where(cls == lbl, p, 0.0), axis=0, keepdims=True)
    ce_ref[0] = jnp.sum(lse - sel).reshape(1, 1)


def backfore_fused(backfore_feature, labels_nhw):
    """Returns (fore_mask_f32 (n,1,h,w), mean cross-entropy of SegLoss)."""
    n, c, h, w = backfore_feature.shape
    l = h * w
    x = backfore_feature.reshape(n, c, l)               # no pad, no cast
    lbl = labels_nhw.reshape(n, 1, l).astype(jnp.int32)
    fore, ce = pl.pallas_call(
        _backfore_kernel,
        out_shape=(jax.ShapeDtypeStruct((n, 1, l), jnp.float32),
                   jax.ShapeDtypeStruct((n, 1, 1), jnp.float32)),
        grid=(n,),
        in_specs=[pl.BlockSpec((1, c, l), lambda i: (i, 0, 0)),
                  pl.BlockSpec((1, 1, l), lambda i: (i, 0, 0))],
        out_specs=(pl.BlockSpec((1, 1, l), lambda i: (i, 0, 0)),
                   pl.BlockSpec((1, 1, 1), lambda i: (i, 0, 0))),
        compiler_params=pltpu.CompilerParams(dimension_semantics=("parallel",)),
    )(x, lbl)
    return fore.reshape(n, 1, h, w), jnp.sum(ce) / (n * l)


def _correct_ce_kernel(cs_ref, fore_ref, ce_ref):
    """CE of [1-s, s] 'logits' vs. fore-mask labels; s = clip(charsum * fm)."""
    cs = cs_ref[0]                                      # (1, W)
    f = fore_ref[0]                                     # (H, W) 0/1 f32
    s = jnp.clip(cs * f, 0.0, 1.0)
    a = 1.0 - s
    m = jnp.maximum(a, s)
    lse = jnp.log(jnp.exp(a - m) + jnp.exp(s - m)) + m
    sel = jnp.where(f > 0.5, s, a)
    ce_ref[0] = jnp.sum(lse - sel).reshape(1, 1)


def correct_ce(charsum_bw, fore_bhw):
    b, h, w = fore_bhw.shape
    ce = pl.pallas_call(
        _correct_ce_kernel,
        out_shape=jax.ShapeDtypeStruct((b, 1, 1), jnp.float32),
        grid=(b,),
        in_specs=[pl.BlockSpec((1, 1, w), lambda i: (i, 0, 0)),
                  pl.BlockSpec((1, h, w), lambda i: (i, 0, 0))],
        out_specs=pl.BlockSpec((1, 1, 1), lambda i: (i, 0, 0)),
        compiler_params=pltpu.CompilerParams(dimension_semantics=("parallel",)),
    )(charsum_bw[:, None, :].astype(jnp.float32), fore_bhw.astype(jnp.float32))
    return jnp.sum(ce) / (b * h * w)


def _level_kernel(x_ref, t_ref, sums_ref):
    """Fused per-level pass: shared log-softmax, CE vs argmax(mask), dice sums."""
    x = x_ref[0].astype(jnp.float32)                    # (C, L) char logits
    ti = t_ref[0]                                       # (C, L) int32 char mask
    tf = ti.astype(jnp.float32)
    c, l = x.shape
    # one shared max / exp / sum over the class axis
    m = jnp.max(x, axis=0, keepdims=True)
    e = jnp.exp(x - m)
    s = jnp.sum(e, axis=0, keepdims=True)
    p = e * pl.reciprocal(s, approx=True)               # softmax (EUP reciprocal)
    lse = jnp.log(s) + m                                # log-sum-exp for CE
    # argmax label over C from the (not necessarily one-hot) mask, first max wins
    cls = jax.lax.broadcasted_iota(jnp.int32, (c, l), 0)
    tmax = jnp.max(ti, axis=0, keepdims=True)
    lbl = jnp.min(jnp.where(ti == tmax, cls, c), axis=0, keepdims=True)
    sel = jnp.sum(jnp.where(cls == lbl, x, 0.0), axis=0, keepdims=True)
    ce = jnp.sum(lse - sel)
    # dice partial sums per class, packed with the CE sum into one output tile
    inter = jnp.sum(p * tf, axis=1, keepdims=True)      # (C, 1)
    s1 = jnp.sum(p, axis=1, keepdims=True)
    s2 = jnp.sum(tf, axis=1, keepdims=True)
    ce_col = jnp.full((c, 1), ce, dtype=jnp.float32)
    sums_ref[0] = jnp.concatenate([inter, s1, s2, ce_col], axis=1)   # (C, 4)


def level_sums(char_feat, scm_int):
    """Per-(sample, class) dice partial sums + per-sample CE sum, one launch."""
    n, c, h, w = char_feat.shape
    l = h * w
    sums = pl.pallas_call(
        _level_kernel,
        out_shape=jax.ShapeDtypeStruct((n, c, 4), jnp.float32),
        grid=(n,),
        in_specs=[pl.BlockSpec((1, c, l), lambda i: (i, 0, 0)),
                  pl.BlockSpec((1, c, l), lambda i: (i, 0, 0))],
        out_specs=pl.BlockSpec((1, c, 4), lambda i: (i, 0, 0)),
        compiler_params=pltpu.CompilerParams(dimension_semantics=("parallel",)),
    )(char_feat.reshape(n, c, l), scm_int.reshape(n, c, l).astype(jnp.int32))
    return sums[:, :, 0], sums[:, :, 1], sums[:, :, 2], sums[:, 0, 3]


# ================================ JAX glue =====================================

def _interp_matrix(out_size, in_size):
    """PyTorch bilinear (align_corners=False) weights as a dense (out,in) matrix."""
    scale = in_size / out_size
    idx = (jnp.arange(out_size, dtype=jnp.float32) + 0.5) * scale - 0.5
    idx = jnp.maximum(idx, 0.0)
    i0f = jnp.floor(idx)
    frac = idx - i0f
    i0 = jnp.clip(i0f.astype(jnp.int32), 0, in_size - 1)
    i1 = jnp.clip(i0 + 1, 0, in_size - 1)
    oh0 = jax.nn.one_hot(i0, in_size, dtype=jnp.float32)
    oh1 = jax.nn.one_hot(i1, in_size, dtype=jnp.float32)
    return oh0 * (1.0 - frac)[:, None] + oh1 * frac[:, None]


def bilinear_resize_nchw(x, out_h, out_w):
    """F.interpolate(mode='bilinear', align_corners=False) via two MXU matmuls."""
    _, _, in_h, in_w = x.shape
    x = x.astype(jnp.float32)
    if (out_h, out_w) == (in_h, in_w):
        return x
    wy = _interp_matrix(out_h, in_h)                        # (out_h, in_h)
    wx = _interp_matrix(out_w, in_w)                        # (out_w, in_w)
    tmp = jnp.einsum('oi,nciw->ncow', wy, x)
    return jnp.einsum('pw,ncow->ncop', wx, tmp)


def correct_1d_location(attn, fore4d, length):
    b, t, s = attn.shape
    _, _, h, w = fore4d.shape
    interp = bilinear_resize_nchw(attn[:, None], t, w)[:, 0]       # (b, T, W)
    valid = (jnp.arange(t)[None, :] < (length - 1)[:, None]).astype(jnp.float32)
    v = interp * valid[:, :, None]
    # Learn_Irrelevant_vector: sum_{j<k} sum_w (v_j v_k)^2 / (len-1), summed over batch
    s2 = jnp.sum(v * v, axis=1)
    s4 = jnp.sum(v ** 4, axis=1)
    irrelevant = jnp.sum(0.5 * jnp.sum(s2 * s2 - s4, axis=1)
                         / (length - 1).astype(jnp.float32))
    # DifferentiableBinarization + per-column union of character responses
    vb = (1.0 / (1.0 + jnp.exp(-70.0 * (interp - 0.1)))) * valid[:, :, None]
    charsum = jnp.sum(vb, axis=1)                                  # (b, W)
    ce = correct_ce(charsum, fore4d[:, 0])
    return ce + irrelevant


def char_segmentation_loss(char_feature_attn, attn, fore_mask, length, alpha):
    b, _, h_m, w_m = char_feature_attn[0].shape
    _, _, h_l, w_l = char_feature_attn[1].shape
    t = attn.shape[1]
    keep = (jnp.arange(t)[None, :] < (length - 1)[:, None]).astype(attn.dtype)
    attn_clean = attn * keep[:, :, None]                           # clear_noise
    fm_f = fore_mask.astype(jnp.float32)

    def make_char_mask(fm_int):
        w_size = fm_int.shape[-1]
        loc = bilinear_resize_nchw(attn_clean[:, None], 26, w_size)[:, 0]  # (b,26,w)
        loc_i = (loc > alpha).astype(jnp.int32)
        single = loc_i[:, :, None, :] * fm_int                              # (b,26,h,w)
        return jnp.concatenate([1 - fm_int, single], axis=1)                # (b,27,h,w)

    def level_loss(char_feat, fm_int):
        n, cc, hh, ww = char_feat.shape
        scm = make_char_mask(fm_int)
        inter, s1, s2, ce_sum = level_sums(char_feat, scm)
        cel = jnp.sum(ce_sum) / (n * hh * ww)
        score = (2.0 * inter + 1.0) / (s1 + s2 + 1.0)                        # (b, cc)
        ln = length - 1
        cls = jnp.arange(cc)[None, :]
        in_range = (cls >= 1) & (cls <= ln[:, None])
        per_sample = jnp.sum(jnp.where(in_range, 1.0 - score, 0.0), axis=1) \
            / ln.astype(jnp.float32)
        dice = jnp.sum(per_sample) / n
        return cel + dice, scm

    fm_low = (bilinear_resize_nchw(fm_f, h_l, w_l) >= 0.4).astype(jnp.int32)
    loss_low, scm_low = level_loss(char_feature_attn[1], fm_low)
    fm_mid = (bilinear_resize_nchw(fm_f, h_m, w_m) >= 0.4).astype(jnp.int32)
    loss_mid, _ = level_loss(char_feature_attn[0], fm_mid)
    return (loss_low, loss_mid), scm_low


def str_loss_forward(masks, backfore_feature, seq1_attention_map, char_feature_attn,
                     length, iteration, alpha):
    nb, nc, nh, nw = masks.shape
    assert nc == 1, "SegLoss label flattening assumes single-channel GT masks"
    n, _, h, w = backfore_feature.shape
    masks_i = (masks > 0.5).astype(jnp.int32)
    if (nh, nw) != (h, w):
        gm = bilinear_resize_nchw(masks_i.astype(jnp.float32), h, w).astype(jnp.int32)
    else:
        gm = masks_i
    labels = gm.reshape(n, h * w)

    # fused: softmax(backfore) + fore mask + SegLoss cross-entropy
    fore4d, predmask_loss = backfore_fused(backfore_feature, labels)
    if iteration > 20000:
        # TODO(synk): the reduce=False / per-sample filtered-mean SegLoss branch
        # is not implemented; falling back to the standard mean cross-entropy.
        pass

    fore_mask = fore4d.astype(jnp.int32)                           # (n,1,h,w) 0/1

    attn = jnp.transpose(seq1_attention_map, (0, 2, 1))            # (b, T, S)
    correct_loss = correct_1d_location(attn, fore4d, length)
    mutual_exclusion_loss, single_char_mask = char_segmentation_loss(
        char_feature_attn, attn, fore_mask, length, alpha)
    return (predmask_loss, correct_loss, mutual_exclusion_loss), single_char_mask, fore_mask


# ================================== demo =======================================

if __name__ == "__main__":
    key = jax.random.PRNGKey(0)
    k1, k2, k3, k4, k5 = jax.random.split(key, 5)
    b, H, W = 2, 16, 16          # backfore / masks spatial size
    T, S = 26, 16                # decode steps / attention width
    C_CHAR = 27                  # 26 chars + background

    masks = jax.random.uniform(k1, (b, 1, H, W), dtype=jnp.float32)
    backfore_feature = jax.random.normal(k2, (b, 2, H, W), dtype=jnp.float32)
    seq1_attention_map = jax.nn.softmax(
        jax.random.normal(k3, (b, S, T), dtype=jnp.float32), axis=1)
    char_feature_attn = [
        jax.random.normal(k4, (b, C_CHAR, 16, 16), dtype=jnp.float32),   # middle
        jax.random.normal(k5, (b, C_CHAR, 8, 8), dtype=jnp.float32),     # low
    ]
    length = jnp.array([5, 8], dtype=jnp.int32)
    iteration = 100
    alpha = 0.3

    losses, single_char_mask, fore_mask = str_loss_forward(
        masks, backfore_feature, seq1_attention_map, char_feature_attn,
        length, iteration, alpha)
    jax.block_until_ready((losses, single_char_mask, fore_mask))
    print("KERNEL_OK")
</pallas_src>

<mosaic_0001>
module attributes {stable_mosaic.version = 11 : i64} {
  func.func @_backfore_kernel(%arg0: i32, %arg1: memref<1x2x256xf32, #tpu.memory_space<vmem>>, %arg2: memref<1x1x256xi32, #tpu.memory_space<vmem>>, %arg3: memref<1x1x256xf32, #tpu.memory_space<vmem>>, %arg4: memref<1x1x1xf32, #tpu.memory_space<vmem>>) attributes {dimension_semantics = [#tpu.dimension_semantics<parallel>], iteration_bounds = array<i64: 2>, scalar_prefetch = 0 : i64, scratch_operands = 0 : i64, tpu.core_type = #tpu.core_type<tc>, window_params = [{transform_indices = @transform_0, window_bounds = array<i64: 1, 2, 256>}, {transform_indices = @transform_1, window_bounds = array<i64: 1, 1, 256>}, {transform_indices = @transform_2, window_bounds = array<i64: 1, 1, 256>}, {transform_indices = @transform_3, window_bounds = array<i64: 1, 1, 1>}]} {
    %c0 = arith.constant 0 : index
    %c0_0 = arith.constant 0 : index
    %c0_1 = arith.constant 0 : index
    %0 = vector.load %arg1[%c0, %c0_0, %c0_1] : memref<1x2x256xf32, #tpu.memory_space<vmem>>, vector<1x2x256xf32>
    %1 = vector.shape_cast %0 : vector<1x2x256xf32> to vector<2x256xf32>
    %c0_2 = arith.constant 0 : index
    %c0_3 = arith.constant 0 : index
    %c0_4 = arith.constant 0 : index
    %2 = vector.load %arg2[%c0_2, %c0_3, %c0_4] : memref<1x1x256xi32, #tpu.memory_space<vmem>>, vector<1x1x256xi32>
    %3 = vector.shape_cast %2 : vector<1x1x256xi32> to vector<1x256xi32>
    %cst = arith.constant dense<0xFF800000> : vector<256xf32>
    %4 = vector.multi_reduction <maximumf>, %1, %cst [0] : vector<2x256xf32> to vector<256xf32>
    %5 = vector.shape_cast %4 : vector<256xf32> to vector<1x256xf32>
    %6 = vector.broadcast %5 : vector<1x256xf32> to vector<2x256xf32>
    %7 = arith.subf %1, %6 : vector<2x256xf32>
    %8 = math.exp %7 : vector<2x256xf32>
    %cst_5 = arith.constant dense<0.000000e+00> : vector<256xf32>
    %9 = vector.multi_reduction <add>, %8, %cst_5 [0] : vector<2x256xf32> to vector<256xf32>
    %10 = vector.shape_cast %9 : vector<256xf32> to vector<1x256xf32>
    %11 = tpu.reciprocal %10 {approx = true} : vector<1x256xf32> -> vector<1x256xf32>
    %12 = vector.broadcast %11 : vector<1x256xf32> to vector<2x256xf32>
    %13 = arith.mulf %8, %12 : vector<2x256xf32>
    %14 = vector.extract_strided_slice %13 {offsets = [1, 0], sizes = [1, 256], strides = [1, 1]} : vector<2x256xf32> to vector<1x256xf32>
    %cst_6 = arith.constant 5.000000e-01 : f32
    %15 = vector.broadcast %cst_6 : f32 to vector<1x256xf32>
    %16 = arith.cmpf ogt, %14, %15 : vector<1x256xf32>
    %17 = arith.extui %16 : vector<1x256xi1> to vector<1x256xi32>
    %18 = arith.sitofp %17 : vector<1x256xi32> to vector<1x256xf32>
    %c0_7 = arith.constant 0 : index
    %c0_8 = arith.constant 0 : index
    %c0_9 = arith.constant 0 : index
    %19 = vector.load %arg3[%c0_7, %c0_8, %c0_9] : memref<1x1x256xf32, #tpu.memory_space<vmem>>, vector<1x1x256xf32>
    %20 = vector.shape_cast %19 : vector<1x1x256xf32> to vector<1x256xf32>
    %21 = vector.shape_cast %18 : vector<1x256xf32> to vector<1x1x256xf32>
    tpu.vector_store %arg3[%c0_7, %c0_8, %c0_9], %21 {strides = array<i32>} : memref<1x1x256xf32, #tpu.memory_space<vmem>>, vector<1x1x256xf32>,
    %cst_10 = arith.constant dense<0xFF800000> : vector<256xf32>
    %22 = vector.multi_reduction <maximumf>, %13, %cst_10 [0] : vector<2x256xf32> to vector<256xf32>
    %23 = vector.shape_cast %22 : vector<256xf32> to vector<1x256xf32>
    %24 = vector.broadcast %23 : vector<1x256xf32> to vector<2x256xf32>
    %25 = arith.subf %13, %24 : vector<2x256xf32>
    %26 = math.exp %25 : vector<2x256xf32>
    %cst_11 = arith.constant dense<0.000000e+00> : vector<256xf32>
    %27 = vector.multi_reduction <add>, %26, %cst_11 [0] : vector<2x256xf32> to vector<256xf32>
    %28 = vector.shape_cast %27 : vector<256xf32> to vector<1x256xf32>
    %29 = math.log %28 : vector<1x256xf32>
    %30 = arith.addf %29, %23 : vector<1x256xf32>
    %31 = tpu.iota {dimensions = array<i32: 0>} : vector<2x256xi32>
    %32 = vector.broadcast %3 : vector<1x256xi32> to vector<2x256xi32>
    %33 = arith.cmpi eq, %31, %32 : vector<2x256xi32>
    %cst_12 = arith.constant 0.000000e+00 : f32
    %34 = vector.broadcast %cst_12 : f32 to vector<2x256xf32>
    %35 = arith.select %33, %13, %34 : vector<2x256xi1>, vector<2x256xf32>
    %cst_13 = arith.constant dense<0.000000e+00> : vector<256xf32>
    %36 = vector.multi_reduction <add>, %35, %cst_13 [0] : vector<2x256xf32> to vector<256xf32>
    %37 = vector.shape_cast %36 : vector<256xf32> to vector<1x256xf32>
    %38 = arith.subf %30, %37 : vector<1x256xf32>
    %39 = vector.shape_cast %38 : vector<1x256xf32> to vector<1x1x256xf32>
    %cst_14 = arith.constant dense<0.000000e+00> : vector<1xf32>
    %40 = vector.multi_reduction <add>, %39, %cst_14 [1, 2] : vector<1x1x256xf32> to vector<1xf32>
    %41 = vector.shape_cast %40 : vector<1xf32> to vector<1x1x1xf32>
    %42 = vector.extract %41[0, 0, 0] : f32 from vector<1x1x1xf32>
    %43 = vector.broadcast %42 : f32 to vector<1x1xf32>
    %c0_15 = arith.constant 0 : index
    %c0_16 = arith.constant 0 : index
    %c0_17 = arith.constant 0 : index
    %44 = vector.load %arg4[%c0_15, %c0_16, %c0_17] : memref<1x1x1xf32, #tpu.memory_space<vmem>>, vector<1x1x1xf32>
    %45 = vector.shape_cast %44 : vector<1x1x1xf32> to vector<1x1xf32>
    %46 = vector.shape_cast %43 : vector<1x1xf32> to vector<1x1x1xf32>
    tpu.vector_store %arg4[%c0_15, %c0_16, %c0_17], %46 {strides = array<i32>} : memref<1x1x1xf32, #tpu.memory_space<vmem>>, vector<1x1x1xf32>,
    return
  }
  func.func @transform_0(%arg0: i32) -> (i32, i32, i32) {
    %c0_i32 = arith.constant 0 : i32
    %c0_i32_0 = arith.constant 0 : i32
    %c0_i32_1 = arith.constant 0 : i32
    return %arg0, %c0_i32, %c0_i32_0 : i32, i32, i32
  }
  func.func @transform_1(%arg0: i32) -> (i32, i32, i32) {
    %c0_i32 = arith.constant 0 : i32
    %c0_i32_0 = arith.constant 0 : i32
    %c0_i32_1 = arith.constant 0 : i32
    return %arg0, %c0_i32, %c0_i32_0 : i32, i32, i32
  }
  func.func @transform_2(%arg0: i32) -> (i32, i32, i32) {
    %c0_i32 = arith.constant 0 : i32
    %c0_i32_0 = arith.constant 0 : i32
    %c0_i32_1 = arith.constant 0 : i32
    return %arg0, %c0_i32, %c0_i32_0 : i32, i32, i32
  }
  func.func @transform_3(%arg0: i32) -> (i32, i32, i32) {
    %c0_i32 = arith.constant 0 : i32
    %c0_i32_0 = arith.constant 0 : i32
    %c0_i32_1 = arith.constant 0 : i32
    return %arg0, %c0_i32, %c0_i32_0 : i32, i32, i32
  }
}

</mosaic_0001>

<bundles_post_ra>
// kernel: tpu_custom_call.1
= control target key start
LH: loop header
LB: loop body
LE: loop exit
PB: predicated region body
PF: predicated region fallthrough
CT: control target
= control target key end

     0   :  { %9 = vsyncpa [#allocation3], 0  ;;  %s1059_s0 = inlined_call_operand.hbm [shape: f32[2,2,256], index: 0, kind: input, shape index: {}]   ;;  %s1060_s1 = inlined_call_operand.hbm [shape: s32[2,1,256], index: 1, kind: input, shape index: {}]   ;;  %s1061_s2 = inlined_call_operand.hbm [shape: f32[2,1,256], index: 2, kind: output, shape index: {0}]   ;;  %s1062_s3 = inlined_call_operand.vmem [shape: f32[2,1,1], index: 3, kind: output, shape index: {1}]  }
   0x1   :  { %11 = vsyncpa [#allocation3 + $0x1], 0 }
   0x2   :  { %12 = vsyncpa [#allocation6], 0 }
   0x3   :  { %14 = vsyncpa [#allocation6 + $0x1], 0 }
   0x4   :  { %15 = vsyncpa [#allocation4], 0 }
   0x5   :  { %17 = vsyncpa [#allocation4 + $0x1], 0  ;;  %s824_s12 = smov 0   ;;  %s826_s13 = smov 0  }
   0x6   :  { %s828_s14 = smov 0   ;;  %s830_s15 = smov 0  }
   0x7 LB: > { %s845_s16 = sadd.s32 4294967295, %s796_s15   ;;  %s582_s17 = sadd.s32 4294967294, %s796_s15   ;;  %s796_s15 = sphi %s830_s15, %s1081_s15   ;;  %s792_s14 = sphi %s828_s14, %s1080_s14   ;;  %s788_s13 = sphi %s826_s13, %s1079_s13   ;;  %s784_s12 = sphi %s824_s12, %s1078_s12  }
   0x8   : > { %s849_s18 = sadd.s32 1, %s796_s15   ;;  %s30_s19 = sadd.s32 1, %s792_s14 }
   0x9   : > { %s27_s20 = ssub.s32 %s796_s15, %s849_s18  ;;  %p37_p0 = scmp.ne.s32.totalorder %s792_s14, %s788_s13 }
   0xa   : > { %p28_p1 = scmp.eq.s32.totalorder %s27_s20, 0  ;;  %p38_p2 = scmp.eq.s32.totalorder %s796_s15, 0 }
   0xb   : > { %p43_p3 = scmp.ne.s32.totalorder %s788_s13, %s784_s12  ;;  %p44_p4 = scmp.eq.s32.totalorder %s845_s16, 0 }
   0xc   : > { %s861_s21 = scalar_select %p28_p1, %s792_s14, %s30_s19  }
   0xd   : > { %p863_p5 = por %p38_p2, %p37_p0  ;;  %p867_p6 = por %p44_p4, %p43_p3 }
   0xe   : > { %p93_p7 = scmp.eq.s32.totalorder %s845_s16, 1  ;;  %p99_p8 = scmp.eq.s32.totalorder %s582_s17, 1 }
   0xf   : > { %s1066_s23 = scalar_select %p867_p6, 1, 0 }
  0x10   : > { %p623_p10 = scmp.lt.s32.totalorder %s796_s15, 2  ;;  %p874_p11 = por %p93_p7, %p37_p0 }
  0x11   : > { %p878_p12 = por %p99_p8, %p43_p3  ;;  %s883_s26 = sand.u32 1, %s792_s14  }
  0x12   : > { %s1067_s24 = scalar_select %p874_p11, 1, 0 }
  0x13   : > { %s1068_s25 = scalar_select %p878_p12, 1, 0 }
  0x14   : > { %s601_s27 = sshll.u32 %s796_s15, 6  ;;  %s585_s28 = sshll.u32 %s883_s26, 2 }
  0x15   : > { %s890_s4 = scalar_lea.hbm %s1059_s0, %s601_s27  ;;  %s149_s5 = scalar_lea.vmem [#allocation2], %s585_s28 }
  0x16   : > { %s157_s6 = sshll.u32 %s149_s5, 4  ;;  %p894_p13 = pnand %p623_p10, %p863_p5  ;;  %s898_s6 = int_to_ptr.vmem [resolvable:$true] %s157_s6 }
  0x17   : > { %s146_s8 = scalar_lea.sflag [#allocation3], %s883_s26  ;;  %s672_s9 = scalar_lea.hbm %s890_s4, 64 }
  0x18   : > { %p673_p2 = scmp.ne.s32.totalorder %s890_s4, %s672_s9  ;;  %p674_p3 = pneg %p894_p13 }
  0x19   : > { %s677_s17 = scalar_lea.hbm %s1059_s0, 128  ;;  %p678_p5 = scmp.lt.s32.totalorder %s890_s4, %s1059_s0 }
  0x1a   : > { %p675_p4 = pnand %p674_p3, %p673_p2  ;;  %p679_p8 = scmp.lt.s32.totalorder %s677_s17, %s672_s9 }
  0x1c   : > { %p676_p7 = pneg %p675_p4  ;;  %p680_p10 = por %p679_p8, %p678_p5 }
  0x1e   : > { %p681_p9 = pnand %p680_p10, %p676_p7 }
  0x20   : > { %684 = shalt.err (!%p681_p9)
}
  0x21   : > { %s685_s22 = scalar_lea.vmem %s898_s6, 64  ;;  %s798_s27 = smov [#allocation2]  }
  0x22   : > { %p686_p0 = scmp.ne.s32.totalorder %s898_s6, %s685_s22  ;;  %s690_s28 = sshll.u32 %s798_s27, 4  ;;  %s691_s28 = int_to_ptr.vmem [resolvable:$false] %s690_s28 }
  0x23   : > { %s692_s29 = scalar_lea.vmem %s691_s28, 128  ;;  %p693_p1 = scmp.lt.s32.totalorder %s898_s6, %s691_s28 }
  0x24   : > { %p688_p2 = pnand %p686_p0, %p674_p3  ;;  %p694_p12 = scmp.lt.s32.totalorder %s692_s29, %s685_s22 }
  0x26   : > { %p689_p4 = pneg %p688_p2  ;;  %p695_p11 = por %p694_p12, %p693_p1 }
  0x28   : > { %p696_p5 = pnand %p695_p11, %p689_p4 }
  0x2a   : > { %699 = shalt.err (!%p696_p5)
}
  0x2b   : > { %615 = dma.hbm_to_vmem [thread:$0]  (!%p894_p13), %s890_s4, 64, %s898_s6, %s146_s8  }
  0x2c   : > { %p1070_p9 = scmp.lt.s32.totalorder %s796_s15, 3  ;;  %p1071_p0 = scmp.ge.s32.totalorder %s796_s15, 1 }
  0x2d   : > { %s588_s5 = sshll.u32 %s883_s26, 1  ;;  %s602_s9 = sshll.u32 %s796_s15, 5 }
  0x2e   : > { %p931_p7 = pnand %p1071_p0, %p1070_p9  ;;  %s940_s17 = scalar_lea.hbm %s1060_s1, %s602_s9 }
  0x2f   : > { %s168_s19 = scalar_lea.vmem [#allocation5], %s588_s5  ;;  %s165_s4 = scalar_lea.sflag [#allocation6], %s883_s26 }
  0x30   : > { %s1072_s30 = scalar_select %p931_p7, 1, 0 }
  0x31   : > { %s176_s20 = sshll.u32 %s168_s19, 4  ;;  %s700_s6 = scalar_lea.hbm %s940_s17, 32  ;;  %s177_s20 = int_to_ptr.vmem [resolvable:$true] %s176_s20 }
  0x32   : > { %p701_p11 = scmp.ne.s32.totalorder %s940_s17, %s700_s6  ;;  %s705_s27 = scalar_lea.hbm %s1060_s1, 64 }
  0x33   : > { %p706_p8 = scmp.lt.s32.totalorder %s940_s17, %s1060_s1  ;;  %p707_p10 = scmp.lt.s32.totalorder %s705_s27, %s700_s6 }
  0x34   : > { %p703_p12 = pnand %p701_p11, %p674_p3 }
  0x35   : > { %p708_p2 = por %p707_p10, %p706_p8 }
  0x36   : > { %p704_p1 = pneg %p703_p12 }
  0x38   : > { %p709_p4 = pnand %p708_p2, %p704_p1 }
  0x3a   : > { %712 = shalt.err (!%p709_p4)
}
  0x3b   : > { %s713_s5 = scalar_lea.vmem %s177_s20, 32  ;;  %s799_s26 = smov [#allocation5]  }
  0x3c   : > { %p714_p5 = scmp.ne.s32.totalorder %s177_s20, %s713_s5  ;;  %s718_s9 = sshll.u32 %s799_s26, 4  ;;  %s719_s9 = int_to_ptr.vmem [resolvable:$false] %s718_s9 }
  0x3d   : > { %s720_s10 = scalar_lea.vmem %s719_s9, 64  ;;  %p721_p11 = scmp.lt.s32.totalorder %s177_s20, %s719_s9 }
  0x3e   : > { %p716_p9 = pnand %p714_p5, %p674_p3  ;;  %p722_p12 = scmp.lt.s32.totalorder %s720_s10, %s713_s5 }
  0x40   : > { %p717_p0 = pneg %p716_p9  ;;  %p723_p6 = por %p722_p12, %p721_p11 }
  0x42   : > { %p724_p7 = pnand %p723_p6, %p717_p0 }
  0x44   : > { %727 = shalt.err (!%p724_p7)
}
  0x45   : > { %618 = dma.hbm_to_vmem [thread:$0]  (!%p894_p13), %s940_s17, 32, %s177_s20, %s165_s4  }
  0x46   : > { %p1073_p1 = scmp.ne.s32.totalorder %s1072_s30, 0 }
  0x47   : > { %s964_s11 = sand.u32 (!%p1073_p1), 1, %s788_s13   ;;  %p1074_p3 = scmp.ne.s32.totalorder (!%p1073_p1), %s1066_s23, 0 }
  0x48   : > { %185 = sbr.rel (%p1073_p1) target bundleno = 445 (0x1bd), region = 28  ;;  %s592_s19 = sshll.u32 (!%p1073_p1), %s964_s11, 2 }
  0x49   : > { %s188_s6 = scalar_lea.sflag (!%p1073_p1), [#allocation3], %s964_s11  ;;  %s191_s8 = scalar_lea.vmem (!%p1073_p1), [#allocation2], %s592_s19 }
  0x4d   : > { %771 = dma.done.wait (%p1074_p3), %s188_s6, 64  }
  0x4e   : > { %773 = vsyncadd (%p1074_p3), %s188_s6, 4294967232  ;;  %s593_s7 = sshll.u32 %s964_s11, 1  ;;  %s197_s30 = scalar_lea.sflag [#allocation6], %s964_s11 }
  0x4f   : > { %s976_s17 = scalar_lea.vmem [#allocation5], %s593_s7 }
  0x50   : > { %775 = dma.done.wait (%p1074_p3), %s197_s30, 32  }
  0x51   : > { %777 = vsyncadd (%p1074_p3), %s197_s30, 4294967264  ;;  %v240_v0 = vlaneseq  ;;  %v800_v1 = vmov 1983009808   ;;  %v234_v6 = vld [vmem:[%s191_s8] sm:$0xf]  ;;  %vm247_vm0 = vcmask 1041408  }
  0x52   : > { %v238_v2 = vunpack.c.l.s4 %v800_v1  ;;  %vm433_vm3 = vcmask 1040384   ;;  %s603_s23 = sshll.u32 %s845_s16, 5  ;;  %s225_s20 = scalar_lea.vmem [#allocation7], %s593_s7 }
  0x53   : > { %v983_v3 = vshrl.u32 %v240_v0, 7  ;;  %vm330_vm5 = vcmp.lt.s32.totalorder %v240_v0, 256  ;;  %s467_s4 = sshll.u32 %s225_s20, 4  ;;  %s465_s28 = scalar_lea.hbm %s1061_s2, %s603_s23  ;;  %s468_s4 = int_to_ptr.vmem [resolvable:$true] %s467_s4 }
  0x54   : > { %v239_v4 = vunpack.c.0.s8 %v238_v2  ;;  %s450_s29 = scalar_lea.sflag [#allocation4], %s964_s11  ;;  %s728_s5 = scalar_lea.vmem %s468_s4, 32 }
  0x55   : > { %p729_p6 = scmp.ne.s32.totalorder %s468_s4, %s728_s5  ;;  %p1075_p13 = scmp.ne.s32.totalorder %s1067_s24, 0 }
  0x56   : > { %v986_v5 = vsub.s32 %v239_v4, %v983_v3  ;;  %s803_s26 = smov [#allocation7]  }
  0x57   : > { %p730_p7 = pnand %p729_p6, %p1075_p13  ;;  %s732_s9 = sshll.u32 %s803_s26, 4  ;;  %s733_s9 = int_to_ptr.vmem [resolvable:$false] %s732_s9 }
  0x58   : > { %v243_v7 = vrot.slane %v234_v6, %v986_v5  ;;  %s734_s10 = scalar_lea.vmem %s733_s9, 64  ;;  %p735_p10 = scmp.lt.s32.totalorder %s468_s4, %s733_s9 }
  0x59   : > { %p731_p8 = pneg %p730_p7  ;;  %p736_p2 = scmp.lt.s32.totalorder %s734_s10, %s728_s5 }
  0x5a   : > { %v244_v8 = vcombine.high %v243_v7, %v243_v7  ;;  %v248_v9 = vsel %vm247_vm0, %v243_v7, -inf }
  0x5b   : > { %v249_v10 = vrot.slane %v248_v9, 4  ;;  %p737_p4 = por %p736_p2, %p735_p10 }
  0x5c   : > { %v255_v11 = vsel %vm247_vm0, %v244_v8, -inf  ;;  %v407_v8 = vsub.s32 0, %v983_v3 }
  0x5d   : > { %v250_v12 = vmax.f32 %v248_v9, %v249_v10  ;;  %v256_v13 = vrot.slane %v255_v11, 4  ;;  %v235_v9 = vld [vmem:[%s976_s17] sm:$0x3]  ;;  %v411_v10 = vsub.s32 1, %v983_v3  ;;  %p738_p5 = pnand %p737_p4, %p731_p8 }
  0x5f   : > { %v251_v14 = vrot.slane %v250_v12, 2  ;;  %v257_v15 = vmax.f32 %v255_v11, %v256_v13  ;;  %v408_v11 = vrot.slane %v235_v9, %v407_v8 }
  0x61   : > { %v252_v16 = vmax.f32 %v250_v12, %v251_v14  ;;  %v258_v17 = vrot.slane %v257_v15, 2  ;;  %v412_v12 = vrot.slane %v235_v9, %v411_v10  ;;  %vm413_vm1 = vcmp.eq.s32.totalorder %v983_v3, %v408_v11 }
  0x63   : > { %v253_v18 = vrot.slane %v252_v16, 1  ;;  %v259_v19 = vmax.f32 %v257_v15, %v258_v17  ;;  %vm414_vm2 = vcmp.eq.s32.totalorder %v983_v3, %v412_v12 }
  0x65   : > { %v254_v20 = vmax.f32 %v252_v16, %v253_v18  ;;  %v260_v21 = vrot.slane %v259_v19, 1 }
  0x67   : > { %v261_v22 = vmax.f32 %v259_v19, %v260_v21 }
  0x69   : > { %v264_v23 = vcombine.low %v254_v20, %v261_v22 }
  0x6b   : > { %v271_v24 = vrot.slane %v264_v23, %v986_v5 }
  0x6d   : > { %v273_v25 = vsub.f32 %v234_v6, %v271_v24 }
  0x6f   : > { %v274_v26 = vmul.f32 1.442695, %v273_v25 }
  0x71   : > { %660 = vpow2.f32 %v274_v26 }
  0x7e   : > { %v661_v27 = vpop.eup %660 }
  0x7f   : > { %v283_v28 = vrot.slane %v661_v27, %v986_v5 }
  0x81   : > { %v284_v29 = vcombine.high %v283_v28, %v283_v28  ;;  %v287_v30 = vsel %vm247_vm0, %v283_v28, 0.0 }
  0x82   : > { %v288_v31 = vrot.slane %v287_v30, 4 }
  0x83   : > { %v294_v32 = vsel %vm247_vm0, %v284_v29, 0.0 }
  0x84   : > { %v289_v33 = vadd.f32 %v288_v31, %v287_v30  ;;  %v295_v34 = vrot.slane %v294_v32, 4 }
  0x86   : > { %v290_v35 = vrot.slane %v289_v33, 2  ;;  %v296_v36 = vadd.f32 %v295_v34, %v294_v32 }
  0x88   : > { %v291_v37 = vadd.f32 %v290_v35, %v289_v33  ;;  %v297_v38 = vrot.slane %v296_v36, 2 }
  0x8a   : > { %v292_v39 = vrot.slane %v291_v37, 1  ;;  %v298_v40 = vadd.f32 %v297_v38, %v296_v36 }
  0x8c   : > { %v293_v41 = vadd.f32 %v292_v39, %v291_v37  ;;  %v299_v42 = vrot.slane %v298_v40, 1 }
  0x8e   : > { %v300_v43 = vadd.f32 %v299_v42, %v298_v40  ;;  %662 = vrcp.f32 %v293_v41 }
  0x90   : > { %664 = vrcp.f32 %v300_v43 }
  0x9b   : > { %v663_v44 = vpop.eup %662 }
  0x9d   : > { %v665_v45 = vpop.eup %664 }
  0x9e   : > { %v305_v46 = vcombine.low %v663_v44, %v665_v45 }
  0xa0   : > { %v312_v47 = vrot.slane %v305_v46, %v986_v5 }
  0xa2   : > { %v996_v48 = vmul.f32 %v661_v27, %v312_v47 }
  0xa4   : > { %v340_v49 = vrot.slane %v996_v48, %v986_v5  ;;  %vm315_vm4 = vcmp.gt.f32.partialorder %v996_v48, 0.5 }
  0xa6   : > { %v341_v50 = vcombine.high %v340_v49, %v340_v49  ;;  %v344_v51 = vsel %vm247_vm0, %v340_v49, -inf  ;;  %v415_v18 = vsel %vm413_vm1, %v340_v49, 0.0 }
  0xa7   : > { %v345_v52 = vrot.slane %v344_v51, 4  ;;  %v417_v23 = vsel %vm247_vm0, %v415_v18, 0.0 }
  0xa8   : > { %v351_v53 = vsel %vm247_vm0, %v341_v50, -inf  ;;  %v416_v22 = vsel %vm414_vm2, %v341_v50, 0.0  ;;  %v418_v28 = vrot.slane %v417_v23, 4 }
  0xa9   : > { %v346_v54 = vmax.f32 %v344_v51, %v345_v52  ;;  %v352_v55 = vrot.slane %v351_v53, 4 }
  0xaa   : > { %v419_v34 = vadd.f32 %v418_v28, %v417_v23 }
  0xab   : > { %v347_v56 = vrot.slane %v346_v54, 2  ;;  %v353_v57 = vmax.f32 %v351_v53, %v352_v55 }
  0xac   : > { %v420_v37 = vrot.slane %v419_v34, 2 }
  0xad   : > { %v348_v58 = vmax.f32 %v346_v54, %v347_v56  ;;  %v354_v59 = vrot.slane %v353_v57, 2 }
  0xae   : > { %v421_v39 = vadd.f32 %v420_v37, %v419_v34 }
  0xaf   : > { %v349_v60 = vrot.slane %v348_v58, 1  ;;  %v355_v61 = vmax.f32 %v353_v57, %v354_v59  ;;  %v801_v57 = vmov 1966171168  }
  0xb0   : > { %v422_v41 = vrot.slane %v421_v39, 1 }
  0xb1   : > { %v350_v62 = vmax.f32 %v348_v58, %v349_v60  ;;  %v356_v63 = vrot.slane %v355_v61, 1  ;;  %v320_v58 = vunpack.c.l.s4 %v801_v57 }
  0xb2   : > { %v423_v45 = vadd.f32 %v422_v41, %v421_v39 }
  0xb3   : > { %v357_v1 = vmax.f32 %v355_v61, %v356_v63  ;;  %v321_v59 = vunpack.c.0.s8 %v320_v58  ;;  %v802_v61 = vmov 0.0  }
  0xb5   : > { %v360_v2 = vcombine.low %v350_v62, %v357_v1  ;;  %v324_v60 = vsub.s32 %v321_v59, %v983_v3 }
  0xb7   : > { %v367_v4 = vrot.slane %v360_v2, %v986_v5 }
  0xb9   : > { %v369_v6 = vsub.f32 %v996_v48, %v367_v4 }
  0xbb   : > { %v370_v7 = vmul.f32 1.442695, %v369_v6 }
  0xbd   : > { %666 = vpow2.f32 %v370_v7 }
  0xca   : > { %v667_v13 = vpop.eup %666 }
  0xcb   : > { %v379_v14 = vrot.slane %v667_v13, %v986_v5  ;;  %v424_v5 = vsel %vm247_vm0, %v416_v22, 0.0 }
  0xcc   : > { %v425_v31 = vrot.slane %v424_v5, 4 }
  0xcd   : > { %v380_v15 = vcombine.high %v379_v14, %v379_v14  ;;  %v383_v16 = vsel %vm247_vm0, %v379_v14, 0.0 }
  0xce   : > { %v384_v17 = vrot.slane %v383_v16, 4  ;;  %v426_v36 = vadd.f32 %v425_v31, %v424_v5 }
  0xcf   : > { %v390_v19 = vsel %vm247_vm0, %v380_v15, 0.0 }
  0xd0   : > { %v385_v20 = vadd.f32 %v384_v17, %v383_v16  ;;  %v391_v21 = vrot.slane %v390_v19, 4  ;;  %v427_v38 = vrot.slane %v426_v36, 2 }
  0xd2   : > { %v386_v24 = vrot.slane %v385_v20, 2  ;;  %v392_v25 = vadd.f32 %v391_v21, %v390_v19  ;;  %v428_v40 = vadd.f32 %v427_v38, %v426_v36 }
  0xd4   : > { %v387_v26 = vadd.f32 %v386_v24, %v385_v20  ;;  %v393_v27 = vrot.slane %v392_v25, 2  ;;  %v429_v42 = vrot.slane %v428_v40, 1 }
  0xd6   : > { %v388_v29 = vrot.slane %v387_v26, 1  ;;  %v394_v30 = vadd.f32 %v393_v27, %v392_v25  ;;  %v430_v50 = vadd.f32 %v429_v42, %v428_v40 }
  0xd8   : > { %v389_v32 = vadd.f32 %v388_v29, %v387_v26  ;;  %v395_v33 = vrot.slane %v394_v30, 1 }
  0xda   : > { %v396_v35 = vadd.f32 %v395_v33, %v394_v30  ;;  %668 = vlog2.f32 %v389_v32 }
  0xdc   : > { %670 = vlog2.f32 %v396_v35 }
  0xe7   : > { %v669_v43 = vpop.eup %668 }
  0xe8   : > { %v398_v44 = vmul.f32 0.6931472, %v669_v43 }
  0xe9   : > { %v671_v46 = vpop.eup %670 }
  0xea   : > { %v400_v47 = vmul.f32 0.6931472, %v671_v46  ;;  %v401_v49 = vadd.f32 %v398_v44, %v350_v62  ;;  %v595_v62 = vsel %vm315_vm4, 1.0, %v802_v61 }
  0xeb   : > { %v325_v63 = vrot.slane %v595_v62, %v324_v60 }
  0xec   : > { %v402_v51 = vadd.f32 %v400_v47, %v357_v1  ;;  %v431_v52 = vsub.f32 %v401_v49, %v423_v45 }
  0xed   : > { %v326_v1 = vcombine.high %v325_v63, %v325_v63 }
  0xee   : > { %v432_v53 = vsub.f32 %v402_v51, %v430_v50  ;;  %v434_v54 = vsel %vm433_vm3, %v431_v52, 0.0 }
  0xef   : > { %332 = vst.msk [vmem:[%s225_s20] sm:$0x3] %vm330_vm5, %v326_v1 }
  0xf0   : > { %v435_v55 = vsel %vm433_vm3, %v432_v53, 0.0 }
  0xf1   : > { %v436_v56 = vadd.f32 %v435_v55, %v434_v54 }
  0xf3   : > { %437 = vadd.xlane.f32.xlu0 %v436_v56 }
  0xf4   : > { %741 = shalt.err (!%p738_p5)
}
  0xf5   : > { %s742_s19 = scalar_lea.hbm %s465_s28, 32  ;;  %s746_s8 = scalar_lea.hbm %s1061_s2, 64 }
  0xf6   : > { %p743_p9 = scmp.ne.s32.totalorder %s465_s28, %s742_s19  ;;  %p747_p12 = scmp.lt.s32.totalorder %s465_s28, %s1061_s2 }
  0xf7   : > { %p748_p1 = scmp.lt.s32.totalorder %s746_s8, %s742_s19 }
  0xf8   : > { %p744_p0 = pnand %p743_p9, %p1075_p13 }
  0xf9   : > { %p749_p3 = por %p748_p1, %p747_p12 }
  0xfa   : > { %p745_p11 = pneg %p744_p0 }
  0xfc   : > { %p750_p6 = pnand %p749_p3, %p745_p11 }
  0xfe   : > { %753 = shalt.err (!%p750_p6)
}
  0xff   : > { %610 = dma.vmem_to_hbm [thread:$0]  (%p1075_p13), %s468_s4, 32, %s465_s28, %s450_s29   ;;  %vm447_vm6 = vcmask 0  }
 0x100   : > { %p231_p7 = scmp.lt.s32.totalorder %s845_s16, 1 }
 0x102   : > { %s1083_s16 = smov (!%p231_p7, %s845_s16), 1 }
 0x103   : > { %s233_s20 = scalar_lea.vmem %s1062_s3, %s1083_s16 }
 0x17c   : > { %v438_v0 = vpop.xlane.xlu0 %437 }
 0x17d   : > { %v439_v3 = vrot.slane %v438_v0, 4 }
 0x17f   : > { %v440_v48 = vadd.f32 %v439_v3, %v438_v0 }
 0x181   : > { %v441_v2 = vrot.slane %v440_v48, 2 }
 0x183   : > { %v442_v4 = vadd.f32 %v441_v2, %v440_v48 }
 0x185   : > { %v443_v6 = vrot.slane %v442_v4, 1 }
 0x187   : > { %v444_v7 = vadd.f32 %v443_v6, %v442_v4 }
 0x189   : > { %604 = vpush %v444_v7 }
 0x1ba   : > { %s605_s22 = spop %604 }
 0x1bb   : > { %v446_v8 = vstv %s605_s22 }
 0x1bc   : > { %448 = vst.msk [vmem:[%s233_s20] sm:$0x1] %vm447_vm6, %v446_v8 }
 0x1bd PF: > { %s482_s24 = sand.u32 1, %s784_s12   ;;  %p1076_p13 = scmp.ne.s32.totalorder %s1068_s25, 0 }
 0x1be   : > { %p1077_p8 = scmp.ge.s32.totalorder %s796_s15, 2  ;;  %s483_s4 = scalar_lea.sflag [#allocation4], %s482_s24 }
 0x1c0   : > { %p620_p10 = pnand %p1077_p8, %p1076_p13 }
 0x1c2   : > { %p621_p2 = pneg %p620_p10 }
 0x1c4   : > { %779 = dma.done.wait (%p621_p2), %s483_s4, 32  }
 0x1c5   : > { %781 = vsyncadd (%p621_p2), %s483_s4, 4294967264  ;;  %p20_p4 = scmp.ge.s32.totalorder %s849_s18, 4   ;;  %s1078_s12 = smov %s788_s13 }
 0x1c6   : > { %s1079_s13 = smov %s792_s14  ;;  %s1080_s14 = smov %s861_s21 }
 0x1c7   : > { %s1081_s15 = smov %s849_s18  ;;  %22 = sbr.rel (!%p20_p4) target bundleno = 7 (0x7), region = 98 }
 0x1cc   :  { %494 = vsyncpa [#allocation3], 1 }
 0x1cd   :  { %496 = vsyncpa [#allocation3 + $0x1], 1 }
 0x1ce   :  { %497 = vsyncpa [#allocation6], 1 }
 0x1cf   :  { %499 = vsyncpa [#allocation6 + $0x1], 1 }
 0x1d0   :  { %500 = vsyncpa [#allocation4], 1 }
 0x1d1   :  { %502 = vsyncpa [#allocation4 + $0x1], 1 }

</bundles_post_ra>
